<compile_context>
chip_gen: v5e
topology: v5e:2x2
jax: 0.10.0
libtpu: 0.0.40
codegen_flags: <defaults>
</compile_context>

<pallas_src>
import functools

import jax
import jax.numpy as jnp
from jax import lax
from jax.experimental import pallas as pl
from jax.experimental.pallas import tpu as pltpu


def _weightnet_kernel(*refs, n_hidden):
    """refs = (obs, wT_0, b_0, ..., wT_{n-1}, b_{n-1}, wT_head, b_head, out).

    obs tile:        (block_b, o_dim)   f32, straight from HBM
    wT_j / b_j:      (h_j, h_{j-1}) / (h_j, 1)  -- transposed weights, bias cols
    activations:     (h_j, block_b)    lane-dense in batch
    out tile:        (1, block_b)      lane-dense row
    """
    obs_ref = refs[0]
    out_ref = refs[-1]
    layer = refs[1:-1]

    # ---- layer 0: NT contraction against the untransposed obs tile --------
    #   h[j, b] = tanh( sum_k w1T[j, k] * obs[b, k] + b1[j] )   -> (h1, block_b)
    wt0, bc0 = layer[0], layer[1]
    h = jnp.tanh(
        lax.dot_general(wt0[...], obs_ref[...],
                        dimension_numbers=(((1,), (1,)), ((), ())),
                        preferred_element_type=jnp.float32)
        + bc0[...])

    # ---- remaining body layers: plain (h_out, h_in) @ (h_in, block_b) -----
    for j in range(1, n_hidden):
        wt, bc = layer[2 * j], layer[2 * j + 1]
        h = jnp.tanh(
            jnp.dot(wt[...], h, preferred_element_type=jnp.float32) + bc[...])

    # ---- weight head: (1, h_last) @ (h_last, block_b) -> (1, block_b) ------
    wt_h, bc_h = layer[2 * n_hidden], layer[2 * n_hidden + 1]
    z = jnp.dot(wt_h[...], h, preferred_element_type=jnp.float32) + bc_h[...]

    # numerically-stable softplus: max(z,0) + log1p(exp(-|z|))  (matches
    # nn.Softplus incl. its threshold=20 linear regime, to float precision)
    out_ref[...] = jnp.maximum(z, 0.0) + jnp.log1p(jnp.exp(-jnp.abs(z)))


def _round_up(x, m):
    return ((x + m - 1) // m) * m


def _num_tensorcores():
    """Best-effort TensorCore count (2 on v7x, 1 on v5e/v6e). Never raises."""
    try:
        d = jax.devices()[0]
        n = getattr(d, "num_cores", None)
        if n:
            return int(n)
        kind = str(getattr(d, "device_kind", "")).lower()
        return 2 if "v7" in kind else 1
    except Exception:  # pragma: no cover - perf heuristic only
        return 1


def weightnet_forward(obs, params, *, max_block_b=8192):
    """Fused WeightNet forward. obs: [B, o_dim] -> [B] positive weights."""
    n_layers = len(params) // 2
    n_hidden = n_layers - 1
    assert n_hidden >= 1, "need at least one hidden layer"

    B, o_dim = obs.shape

    # ---- batch tile choice -------------------------------------------------
    # Multiples of 256 keep MXU output tiles / stores unmasked on all
    # generations (256 = v6e/v7x MXU output width, a multiple of the 128-wide
    # lane axis for v5e).  Large tiles amortize the ~0.35us per-step pipeline
    # overhead; 8192 rows ~= 11 MiB VMEM with the lane-dense layout.
    LANE_ALIGN = 256
    block_b = min(max_block_b, _round_up(B, LANE_ALIGN))
    num_blocks = pl.cdiv(B, block_b)
    # Only split a single big tile when there are 2 TensorCores to feed (v7x);
    # on v5e/v6e the split would just add a second grid step for nothing.
    if _num_tensorcores() >= 2 and num_blocks == 1 and block_b >= 2 * LANE_ALIGN:
        block_b = _round_up(pl.cdiv(block_b, 2), LANE_ALIGN)
        num_blocks = pl.cdiv(B, block_b)
    b_pad = num_blocks * block_b

    # ---- operand plumbing --------------------------------------------------
    # obs stays in f32 (module does obs.float()); no wrapper cast pass over
    # the dominant HBM stream.  Zero padding is only materialized for
    # non-tile-aligned batches.
    obs_f = obs.astype(jnp.float32)
    if b_pad != B:
        obs_f = jnp.pad(obs_f, ((0, b_pad - B), (0, 0)))

    # Weights/biases are tiny constants: transpose weights to (fan_out, fan_in)
    # and reshape biases to (fan_out, 1) columns for the lane-dense layout.
    ws = params[0::2]
    bs = params[1::2]
    wt_list = [w.astype(jnp.float32).T for w in ws]            # (out, in)
    bc_list = [b.astype(jnp.float32).reshape(-1, 1) for b in bs]  # (out, 1)

    inputs = [obs_f]
    in_specs = [pl.BlockSpec((block_b, o_dim), lambda i: (i, 0))]
    for wt, bc in zip(wt_list, bc_list):
        inputs += [wt, bc]
        in_specs += [pl.BlockSpec(wt.shape, lambda i: (0, 0)),
                     pl.BlockSpec(bc.shape, lambda i: (0, 0))]

    out = pl.pallas_call(
        functools.partial(_weightnet_kernel, n_hidden=n_hidden),
        out_shape=jax.ShapeDtypeStruct((num_blocks, 1, block_b), jnp.float32),
        grid_spec=pltpu.PrefetchScalarGridSpec(
            num_scalar_prefetch=0,
            grid=(num_blocks,),
            in_specs=in_specs,
            # lane-dense output: one unmasked (1, block_b) row per grid step
            out_specs=pl.BlockSpec((None, 1, block_b), lambda i: (i, 0, 0)),
        ),
        compiler_params=pltpu.CompilerParams(
            dimension_semantics=("parallel",),
            vmem_limit_bytes=32 * 1024 * 1024),
    )(*inputs)

    # torch.squeeze(weight): [B, 1] -> [B]  (drop zero-padded rows)
    return out.reshape(b_pad)[:B]


def init_weightnet_params(key, o_dim, hidden_sizes):
    """PyTorch-style Linear init: U(-1/sqrt(fan_in), 1/sqrt(fan_in))."""
    sizes = [o_dim] + list(hidden_sizes) + [1]
    params = []
    for fan_in, fan_out in zip(sizes[:-1], sizes[1:]):
        key, kw, kb = jax.random.split(key, 3)
        bound = 1.0 / jnp.sqrt(jnp.float32(fan_in))
        w = jax.random.uniform(kw, (fan_in, fan_out), jnp.float32,
                               -bound, bound)
        b = jax.random.uniform(kb, (1, fan_out), jnp.float32, -bound, bound)
        params += [w, b]
    return tuple(params)


def _reference_forward(obs, params):
    """Pure-JAX f32 reference (matches the PyTorch module)."""
    x = obs.astype(jnp.float32)
    n_layers = len(params) // 2
    for j in range(n_layers - 1):
        x = jnp.tanh(x @ params[2 * j] + params[2 * j + 1])
    z = x @ params[-2] + params[-1]
    return jnp.squeeze(jax.nn.softplus(z), axis=-1)


if __name__ == "__main__":
    key = jax.random.PRNGKey(0)

    o_dim = 6
    hidden_sizes = (32, 32)

    key, k_obs, k_par = jax.random.split(key, 3)
    params = init_weightnet_params(k_par, o_dim, hidden_sizes)

    # --- small canonical batch (single grid step) ---------------------------
    batch = 16
    obs = jax.random.normal(k_obs, (batch, o_dim), jnp.float32)
    fwd = jax.jit(weightnet_forward)
    out = fwd(obs, params)
    jax.block_until_ready(out)

    assert out.shape == (batch,)
    assert bool(jnp.all(jnp.isfinite(out)))
    assert bool(jnp.all(out > 0.0))            # softplus output is positive
    ref = _reference_forward(obs, params)
    assert bool(jnp.allclose(out, ref, rtol=2e-2, atol=2e-2)), (
        float(jnp.max(jnp.abs(out - ref))))

    # --- ragged multi-block batch (exercises grid + zero-padding path) ------
    key, k2 = jax.random.split(key)
    obs2 = jax.random.normal(k2, (600, o_dim), jnp.float32)
    fwd_small_tiles = jax.jit(functools.partial(weightnet_forward,
                                                max_block_b=256))
    out2 = fwd_small_tiles(obs2, params)
    jax.block_until_ready(out2)
    ref2 = _reference_forward(obs2, params)
    assert out2.shape == (600,)
    assert bool(jnp.allclose(out2, ref2, rtol=2e-2, atol=2e-2))

    print("KERNEL_OK")
</pallas_src>

<mosaic_0001>
module attributes {stable_mosaic.version = 11 : i64} {
  func.func @_weightnet_kernel(%arg0: i32, %arg1: memref<256x6xf32, #tpu.memory_space<vmem>>, %arg2: memref<32x6xf32, #tpu.memory_space<vmem>>, %arg3: memref<32x1xf32, #tpu.memory_space<vmem>>, %arg4: memref<32x32xf32, #tpu.memory_space<vmem>>, %arg5: memref<32x1xf32, #tpu.memory_space<vmem>>, %arg6: memref<1x32xf32, #tpu.memory_space<vmem>>, %arg7: memref<1x1xf32, #tpu.memory_space<vmem>>, %arg8: memref<1x1x256xf32, #tpu.memory_space<vmem>>) attributes {dimension_semantics = [#tpu.dimension_semantics<parallel>], iteration_bounds = array<i64: 1>, scalar_prefetch = 0 : i64, scratch_operands = 0 : i64, tpu.core_type = #tpu.core_type<tc>, window_params = [{transform_indices = @transform_0, window_bounds = array<i64: 256, 6>}, {pipeline_mode = #tpu.pipeline_mode<synchronous>, transform_indices = @transform_1, window_bounds = array<i64: 32, 6>}, {pipeline_mode = #tpu.pipeline_mode<synchronous>, transform_indices = @transform_2, window_bounds = array<i64: 32, 1>}, {pipeline_mode = #tpu.pipeline_mode<synchronous>, transform_indices = @transform_3, window_bounds = array<i64: 32, 32>}, {pipeline_mode = #tpu.pipeline_mode<synchronous>, transform_indices = @transform_4, window_bounds = array<i64: 32, 1>}, {pipeline_mode = #tpu.pipeline_mode<synchronous>, transform_indices = @transform_5, window_bounds = array<i64: 1, 32>}, {pipeline_mode = #tpu.pipeline_mode<synchronous>, transform_indices = @transform_6, window_bounds = array<i64: 1, 1>}, {transform_indices = @transform_7, window_bounds = array<i64: 1, 1, 256>}]} {
    %c0 = arith.constant 0 : index
    %c0_0 = arith.constant 0 : index
    %0 = vector.load %arg2[%c0, %c0_0] : memref<32x6xf32, #tpu.memory_space<vmem>>, vector<32x6xf32>
    %c0_1 = arith.constant 0 : index
    %c0_2 = arith.constant 0 : index
    %1 = vector.load %arg1[%c0_1, %c0_2] : memref<256x6xf32, #tpu.memory_space<vmem>>, vector<256x6xf32>
    %cst = arith.constant dense<0.000000e+00> : vector<32x256xf32>
    %2 = tpu.matmul %0, %1, %cst {dimension_numbers = #tpu.dot_dimension_numbers<[1], [1], [0], [0], [0, 0, 1, 0], [], []>} : vector<32x6xf32>, vector<256x6xf32>, vector<32x256xf32> -> vector<32x256xf32>
    %c0_3 = arith.constant 0 : index
    %c0_4 = arith.constant 0 : index
    %3 = vector.load %arg3[%c0_3, %c0_4] : memref<32x1xf32, #tpu.memory_space<vmem>>, vector<32x1xf32>
    %4 = vector.broadcast %3 : vector<32x1xf32> to vector<32x256xf32>
    %5 = arith.addf %2, %4 : vector<32x256xf32>
    %6 = math.tanh %5 : vector<32x256xf32>
    %c0_5 = arith.constant 0 : index
    %c0_6 = arith.constant 0 : index
    %7 = vector.load %arg4[%c0_5, %c0_6] : memref<32x32xf32, #tpu.memory_space<vmem>>, vector<32x32xf32>
    %cst_7 = arith.constant dense<0.000000e+00> : vector<32x256xf32>
    %8 = tpu.matmul %7, %6, %cst_7 {dimension_numbers = #tpu.dot_dimension_numbers<[1], [0], [0], [1], [0, 0, 1, 1], [], []>} : vector<32x32xf32>, vector<32x256xf32>, vector<32x256xf32> -> vector<32x256xf32>
    %c0_8 = arith.constant 0 : index
    %c0_9 = arith.constant 0 : index
    %9 = vector.load %arg5[%c0_8, %c0_9] : memref<32x1xf32, #tpu.memory_space<vmem>>, vector<32x1xf32>
    %10 = vector.broadcast %9 : vector<32x1xf32> to vector<32x256xf32>
    %11 = arith.addf %8, %10 : vector<32x256xf32>
    %12 = math.tanh %11 : vector<32x256xf32>
    %c0_10 = arith.constant 0 : index
    %c0_11 = arith.constant 0 : index
    %13 = vector.load %arg6[%c0_10, %c0_11] : memref<1x32xf32, #tpu.memory_space<vmem>>, vector<1x32xf32>
    %cst_12 = arith.constant dense<0.000000e+00> : vector<1x256xf32>
    %14 = tpu.matmul %13, %12, %cst_12 {dimension_numbers = #tpu.dot_dimension_numbers<[1], [0], [0], [1], [0, 0, 1, 1], [], []>} : vector<1x32xf32>, vector<32x256xf32>, vector<1x256xf32> -> vector<1x256xf32>
    %c0_13 = arith.constant 0 : index
    %c0_14 = arith.constant 0 : index
    %15 = vector.load %arg7[%c0_13, %c0_14] : memref<1x1xf32, #tpu.memory_space<vmem>>, vector<1x1xf32>
    %16 = vector.broadcast %15 : vector<1x1xf32> to vector<1x256xf32>
    %17 = arith.addf %14, %16 : vector<1x256xf32>
    %cst_15 = arith.constant 0.000000e+00 : f32
    %18 = vector.broadcast %cst_15 : f32 to vector<1x256xf32>
    %19 = arith.maximumf %17, %18 : vector<1x256xf32>
    %20 = math.absf %17 : vector<1x256xf32>
    %cst_16 = arith.constant 0.000000e+00 : f32
    %21 = vector.broadcast %cst_16 : f32 to vector<1x256xf32>
    %22 = arith.subf %21, %20 : vector<1x256xf32>
    %23 = math.exp %22 : vector<1x256xf32>
    %24 = math.log1p %23 : vector<1x256xf32>
    %25 = arith.addf %19, %24 : vector<1x256xf32>
    %c0_17 = arith.constant 0 : index
    %c0_18 = arith.constant 0 : index
    %c0_19 = arith.constant 0 : index
    %26 = vector.load %arg8[%c0_17, %c0_18, %c0_19] : memref<1x1x256xf32, #tpu.memory_space<vmem>>, vector<1x1x256xf32>
    %27 = vector.shape_cast %26 : vector<1x1x256xf32> to vector<1x256xf32>
    %28 = vector.shape_cast %25 : vector<1x256xf32> to vector<1x1x256xf32>
    tpu.vector_store %arg8[%c0_17, %c0_18, %c0_19], %28 {strides = array<i32>} : memref<1x1x256xf32, #tpu.memory_space<vmem>>, vector<1x1x256xf32>,
    return
  }
  func.func @transform_0(%arg0: i32) -> (i32, i32) {
    %c0_i32 = arith.constant 0 : i32
    %c0_i32_0 = arith.constant 0 : i32
    return %arg0, %c0_i32 : i32, i32
  }
  func.func @transform_1(%arg0: i32) -> (i32, i32) {
    %c0_i32 = arith.constant 0 : i32
    %c0_i32_0 = arith.constant 0 : i32
    %c0_i32_1 = arith.constant 0 : i32
    return %c0_i32, %c0_i32_0 : i32, i32
  }
  func.func @transform_2(%arg0: i32) -> (i32, i32) {
    %c0_i32 = arith.constant 0 : i32
    %c0_i32_0 = arith.constant 0 : i32
    %c0_i32_1 = arith.constant 0 : i32
    return %c0_i32, %c0_i32_0 : i32, i32
  }
  func.func @transform_3(%arg0: i32) -> (i32, i32) {
    %c0_i32 = arith.constant 0 : i32
    %c0_i32_0 = arith.constant 0 : i32
    %c0_i32_1 = arith.constant 0 : i32
    return %c0_i32, %c0_i32_0 : i32, i32
  }
  func.func @transform_4(%arg0: i32) -> (i32, i32) {
    %c0_i32 = arith.constant 0 : i32
    %c0_i32_0 = arith.constant 0 : i32
    %c0_i32_1 = arith.constant 0 : i32
    return %c0_i32, %c0_i32_0 : i32, i32
  }
  func.func @transform_5(%arg0: i32) -> (i32, i32) {
    %c0_i32 = arith.constant 0 : i32
    %c0_i32_0 = arith.constant 0 : i32
    %c0_i32_1 = arith.constant 0 : i32
    return %c0_i32, %c0_i32_0 : i32, i32
  }
  func.func @transform_6(%arg0: i32) -> (i32, i32) {
    %c0_i32 = arith.constant 0 : i32
    %c0_i32_0 = arith.constant 0 : i32
    %c0_i32_1 = arith.constant 0 : i32
    return %c0_i32, %c0_i32_0 : i32, i32
  }
  func.func @transform_7(%arg0: i32) -> (i32, i32, i32) {
    %c0_i32 = arith.constant 0 : i32
    %c0_i32_0 = arith.constant 0 : i32
    %c0_i32_1 = arith.constant 0 : i32
    return %arg0, %c0_i32, %c0_i32_0 : i32, i32, i32
  }
}

</mosaic_0001>

<bundles_post_ra>
// kernel: weightnet_forward.1
= control target key start
LH: loop header
LB: loop body
LE: loop exit
PB: predicated region body
PF: predicated region fallthrough
CT: control target
= control target key end

     0   :  { %vm88_vm0 = vcmask 48128   ;;  %v560_v21 = vmov 0   ;;  %vm291_vm1 = vcmask 261120   ;;  %vm454_vm4 = vcmask 1040384   ;;  %s804_s0 = inlined_call_operand.vmem [shape: f32[256,6], index: 0, kind: input, shape index: {}]   ;;  %s805_s2 = inlined_call_operand.vmem [shape: f32[32,1], index: 2, kind: input, shape index: {}]   ;;  %s806_s4 = inlined_call_operand.vmem [shape: f32[32,1], index: 4, kind: input, shape index: {}]   ;;  %s807_s1 = inlined_call_operand.vmem [shape: f32[32,6], index: 1, kind: input, shape index: {}]   ;;  %s808_s6 = inlined_call_operand.<no memory space> [shape: f32[1,1], index: 6, kind: input, shape index: {}]   ;;  %s809_s3 = inlined_call_operand.vmem [shape: f32[32,32], index: 3, kind: input, shape index: {}]   ;;  %s810_s5 = inlined_call_operand.vmem [shape: f32[1,32], index: 5, kind: input, shape index: {}]   ;;  %s811_s7 = inlined_call_operand.vmem [shape: f32[1,1,256], index: 7, kind: output, shape index: {}]  }
   0x1   :  { %v47_v0 = vld [vmem:[%s804_s0 + $0x78] sm:$0xff]  ;;  %v46_v2 = vld [vmem:[%s804_s0 + $0x70] sm:$0xff]  ;;  %v45_v4 = vld [vmem:[%s804_s0 + $0x68] sm:$0xff]  ;;  %518 = vset.pattern.permute.xlu1 %v560_v21  ;;  %517 = vset.pattern.permute.xlu0 %v560_v21 }
   0x2   :  { %v63_v1 = vld [vmem:[%s804_s0 + $0xf8] sm:$0xff]  ;;  %466 = vmatpush.xpose.msk.msra.mxu0 %vm88_vm0, %v47_v0  ;;  %v62_v3 = vld [vmem:[%s804_s0 + $0xf0] sm:$0xff]  ;;  %v61_v5 = vld [vmem:[%s804_s0 + $0xe8] sm:$0xff]  ;;  %519 = vset.pattern.permute.xlu2 %v560_v21 }
   0x3   :  { %486 = vmatpush.xpose.msk.msra.mxu1 %vm88_vm0, %v63_v1  ;;  %v44_v6 = vld [vmem:[%s804_s0 + $0x60] sm:$0xff]  ;;  %v43_v8 = vld [vmem:[%s804_s0 + $0x58] sm:$0xff]  ;;  %v42_v10 = vld [vmem:[%s804_s0 + $0x50] sm:$0xff] }
   0x4   :  { %v60_v7 = vld [vmem:[%s804_s0 + $0xe0] sm:$0xff]  ;;  %v59_v9 = vld [vmem:[%s804_s0 + $0xd8] sm:$0xff]  ;;  %v58_v11 = vld [vmem:[%s804_s0 + $0xd0] sm:$0xff] }
   0x5   :  { %v41_v12 = vld [vmem:[%s804_s0 + $0x48] sm:$0xff]  ;;  %v40_v14 = vld [vmem:[%s804_s0 + $0x40] sm:$0xff]  ;;  %v39_v16 = vld [vmem:[%s804_s0 + $0x38] sm:$0xff] }
   0x6   :  { %467 = vmatpush.xpose.msk.msra.mxu0 %vm88_vm0, %v46_v2  ;;  %v57_v13 = vld [vmem:[%s804_s0 + $0xc8] sm:$0xff]  ;;  %v56_v15 = vld [vmem:[%s804_s0 + $0xc0] sm:$0xff]  ;;  %v55_v17 = vld [vmem:[%s804_s0 + $0xb8] sm:$0xff]  ;;  %v12_v2 = vstv %s808_s6 }
   0x7   :  { %487 = vmatpush.xpose.msk.msra.mxu1 %vm88_vm0, %v62_v3  ;;  %v65_v18 = vld [vmem:[%s805_s2 + $0x8] sm:$0xff]  ;;  %v38_v19 = vld [vmem:[%s804_s0 + $0x30] sm:$0xff]  ;;  %v64_v24 = vld [vmem:[%s805_s2] sm:$0xff]  ;;  %13 = vst [vmem:[#allocation2] sm:$0x1] %v12_v2 }
   0x8   :  { %v54_v20 = vld [vmem:[%s804_s0 + $0xb0] sm:$0xff]  ;;  %75 = vperm.xlu1 %518, %v65_v18   ;;  %v37_v22 = vld [vmem:[%s804_s0 + $0x28] sm:$0xff]  ;;  %v67_v25 = vld [vmem:[%s805_s2 + $0x18] sm:$0xff] }
   0x9   :  { %v53_v23 = vld [vmem:[%s804_s0 + $0xa8] sm:$0xff]  ;;  %v36_v26 = vld [vmem:[%s804_s0 + $0x20] sm:$0xff]  ;;  %85 = vperm.xlu0 %517, %v67_v25   ;;  %v35_v28 = vld [vmem:[%s804_s0 + $0x18] sm:$0xff] }
   0xa   :  { %468 = vmatpush.xpose.msk.msra.mxu0 %vm88_vm0, %v45_v4  ;;  %v52_v27 = vld [vmem:[%s804_s0 + $0xa0] sm:$0xff]  ;;  %v51_v29 = vld [vmem:[%s804_s0 + $0x98] sm:$0xff]  ;;  %v66_v30 = vld [vmem:[%s805_s2 + $0x10] sm:$0xff] }
   0xb   :  { %488 = vmatpush.xpose.msk.msra.mxu1 %vm88_vm0, %v61_v5  ;;  %v34_v31 = vld [vmem:[%s804_s0 + $0x10] sm:$0xff]  ;;  %v33_v33 = vld [vmem:[%s804_s0 + $0x8] sm:$0xff]  ;;  %v267_v36 = vld [vmem:[%s806_s4] sm:$0xff] }
   0xc   :  { %v50_v32 = vld [vmem:[%s804_s0 + $0x90] sm:$0xff]  ;;  %v49_v34 = vld [vmem:[%s804_s0 + $0x88] sm:$0xff]  ;;  %v32_v37 = vld [vmem:[%s804_s0] sm:$0xff] }
   0xd   :  { %v268_v35 = vld [vmem:[%s806_s4 + $0x8] sm:$0xff]  ;;  %v48_v38 = vld [vmem:[%s804_s0 + $0x80] sm:$0xff]  ;;  %v30_v41 = vld [vmem:[%s807_s1 + $0x10] sm:$0xff] }
   0xe   :  { %469 = vmatpush.xpose.msk.msra.mxu0 %vm88_vm0, %v44_v6  ;;  %v28_v39 = vld [vmem:[%s807_s1] sm:$0xff]  ;;  %v29_v40 = vld [vmem:[%s807_s1 + $0x8] sm:$0xff]  ;;  %v31_v42 = vld [vmem:[%s807_s1 + $0x18] sm:$0xff] }
   0xf   :  { %489 = vmatpush.xpose.msk.msra.mxu1 %vm88_vm0, %v60_v7  ;;  %v270_v1 = vld [vmem:[%s806_s4 + $0x18] sm:$0xff]  ;;  %v263_v7 = vld [vmem:[%s809_s3] sm:$0xff] }
  0x10   :  { %70 = vperm.xlu1 %518, %v64_v24   ;;  %288 = vperm.xlu2 %519, %v270_v1  }
  0x11   :  { %80 = vperm.xlu0 %517, %v66_v30  }
  0x12   :  { %470 = vmatpush.xpose.msk.msra.mxu0 %vm88_vm0, %v43_v8 }
  0x13   :  { %490 = vmatpush.xpose.msk.msra.mxu1 %vm88_vm0, %v59_v9 }
  0x16   :  { %471 = vmatpush.xpose.msk.msra.mxu0 %vm88_vm0, %v42_v10  ;;  %v269_v10 = vld [vmem:[%s806_s4 + $0x10] sm:$0xff] }
  0x17   :  { %491 = vmatpush.xpose.msk.msra.mxu1 %vm88_vm0, %v58_v11  ;;  %v264_v11 = vld [vmem:[%s809_s3 + $0x8] sm:$0xff] }
  0x18   :  { %273 = vperm.xlu1 %518, %v267_v36   ;;  %283 = vperm.xlu2 %519, %v269_v10  }
  0x19   :  { %278 = vperm.xlu0 %517, %v268_v35  }
  0x1a   :  { %472 = vmatpush.xpose.msk.msra.mxu0 %vm88_vm0, %v41_v12  ;;  %v371_v12 = vld [vmem:[#allocation2] sm:$0x1] }
  0x1b   :  { %492 = vmatpush.xpose.msk.msra.mxu1 %vm88_vm0, %v57_v13  ;;  %v265_v13 = vld [vmem:[%s809_s3 + $0x10] sm:$0xff] }
  0x1e   :  { %473 = vmatpush.xpose.msk.msra.mxu0 %vm88_vm0, %v40_v14  ;;  %v266_v14 = vld [vmem:[%s809_s3 + $0x18] sm:$0xff] }
  0x1f   :  { %493 = vmatpush.xpose.msk.msra.mxu1 %vm88_vm0, %v56_v15 }
  0x20   :  { %374 = vperm.xlu2 %519, %v371_v12  }
  0x22   :  { %474 = vmatpush.xpose.msk.msra.mxu0 %vm88_vm0, %v39_v16 }
  0x23   :  { %494 = vmatpush.xpose.msk.msra.mxu1 %vm88_vm0, %v55_v17 }
  0x26   :  { %475 = vmatpush.xpose.msk.msra.mxu0 %vm88_vm0, %v38_v19 }
  0x27   :  { %495 = vmatpush.xpose.msk.msra.mxu1 %vm88_vm0, %v54_v20 }
  0x2a   :  { %476 = vmatpush.xpose.msk.msra.mxu0 %vm88_vm0, %v37_v22 }
  0x2b   :  { %496 = vmatpush.xpose.msk.msra.mxu1 %vm88_vm0, %v53_v23 }
  0x2e   :  { %477 = vmatpush.xpose.msk.msra.mxu0 %vm88_vm0, %v36_v26 }
  0x2f   :  { %497 = vmatpush.xpose.msk.msra.mxu1 %vm88_vm0, %v52_v27 }
  0x32   :  { %478 = vmatpush.xpose.msk.msra.mxu0 %vm88_vm0, %v35_v28 }
  0x33   :  { %498 = vmatpush.xpose.msk.msra.mxu1 %vm88_vm0, %v51_v29 }
  0x36   :  { %479 = vmatpush.xpose.msk.msra.mxu0 %vm88_vm0, %v34_v31 }
  0x37   :  { %499 = vmatpush.xpose.msk.msra.mxu1 %vm88_vm0, %v50_v32 }
  0x3a   :  { %480 = vmatpush.xpose.msk.msra.mxu0 %vm88_vm0, %v33_v33 }
  0x3b   :  { %500 = vmatpush.xpose.msk.msra.mxu1 %vm88_vm0, %v49_v34 }
  0x3e   :  { %481 = vmatpush.xpose.msk.msra.mxu0 %vm88_vm0, %v32_v37 }
  0x3f   :  { %501 = vmatpush.xpose.msk.msra.mxu1 %vm88_vm0, %v48_v38 }
  0x41   :  { %482 = vmatmul.msk.f32.vlgmr.msra.gmra.mxu0 %vm88_vm0, %v28_v39 }
  0x42   :  { %502 = vmatmul.msk.f32.vlgmr.msra.gmra.mxu1 %vm88_vm0, %v28_v39 }
  0x49   :  { %483 = vmatmul.msk.f32.gmra.mxu0 %vm88_vm0, %v29_v40 }
  0x4a   :  { %503 = vmatmul.msk.f32.gmra.mxu1 %vm88_vm0, %v29_v40 }
  0x51   :  { %484 = vmatmul.msk.f32.gmra.mxu0 %vm88_vm0, %v30_v41 }
  0x52   :  { %504 = vmatmul.msk.f32.gmra.mxu1 %vm88_vm0, %v30_v41  ;;  %v370_v41 = vld [vmem:[%s810_s5] sm:$0x1] }
  0x59   :  { %485 = vmatmul.msk.f32.gmra.mxu0 %vm88_vm0, %v31_v42 }
  0x5a   :  { %505 = vmatmul.msk.f32.gmra.mxu1 %vm88_vm0, %v31_v42 }
  0x6a   :  { %v289_v19 = vpop.permute.xlu2 %288 }
  0x72   :  { %v284_v22 = vpop.permute.xlu2 %283 }
  0x7a   :  { %v76_v50 = vpop.permute.xlu1 %75 }
  0x7b   :  { %v86_v47 = vpop.permute.xlu0 %85 }
  0x82   :  { %v71_v58 = vpop.permute.xlu1 %70 }
  0x83   :  { %v81_v51 = vpop.permute.xlu0 %80 }
  0x8a   :  { %v274_v31 = vpop.permute.xlu1 %273 }
  0x8b   :  { %v279_v27 = vpop.permute.xlu0 %278 }
  0xbe   :  { %v214_v43 = vpop.f32.mrf.mxu0 }
  0xbf   :  { %v243_v44 = vpop.f32.mrf.mxu1  ;;  %v215_v61 = vadd.f32 %v214_v43, %v71_v58 }
  0xc0   :  { %v244_v62 = vadd.f32 %v243_v44, %v71_v58  ;;  %v375_v44 = vpop.permute.xlu2 %374 }
  0xc6   :  { %v217_v45 = vpop.f32.mrf.mxu0 }
  0xc7   :  { %v246_v46 = vpop.f32.mrf.mxu1  ;;  %v218_v59 = vadd.f32 %v217_v45, %v76_v50  ;;  %v377_v45 = vperm.slane %v375_v44, 0 }
  0xc8   :  { %v247_v60 = vadd.f32 %v246_v46, %v76_v50 }
  0xce   :  { %v220_v48 = vpop.f32.mrf.mxu0 }
  0xcf   :  { %v249_v49 = vpop.f32.mrf.mxu1  ;;  %v221_v54 = vadd.f32 %v220_v48, %v81_v51 }
  0xd0   :  { %v250_v57 = vadd.f32 %v249_v49, %v81_v51 }
  0xd6   :  { %v223_v52 = vpop.f32.mrf.mxu0 }
  0xd7   :  { %v252_v53 = vpop.f32.mrf.mxu1  ;;  %v224_v55 = vadd.f32 %v223_v52, %v86_v47 }
  0xd8   :  { %v253_v56 = vadd.f32 %v252_v53, %v86_v47 }
  0xd9   :  { %520 = vtanh.f32 %v224_v55 }
  0xda   :  { %522 = vtanh.f32 %v253_v56 }
  0xdb   :  { %524 = vtanh.f32 %v221_v54 }
  0xdc   :  { %526 = vtanh.f32 %v250_v57 }
  0xdd   :  { %528 = vtanh.f32 %v218_v59 }
  0xde   :  { %530 = vtanh.f32 %v247_v60 }
  0xdf   :  { %v521_v63 = vpop.eup %520  ;;  %532 = vtanh.f32 %v215_v61 }
  0xe0   :  { %v523_v0 = vpop.eup %522  ;;  %534 = vtanh.f32 %v244_v62  ;;  %316 = vmatpush.msra.mxu2 %v521_v63 }
  0xe1   :  { %v525_v3 = vpop.eup %524  ;;  %345 = vmatpush.msra.mxu3 %v523_v0 }
  0xe2   :  { %v527_v4 = vpop.eup %526  ;;  %317 = vmatpush.msra.mxu2 %v525_v3 }
  0xe3   :  { %v529_v5 = vpop.eup %528  ;;  %346 = vmatpush.msra.mxu3 %v527_v4 }
  0xe4   :  { %v531_v6 = vpop.eup %530  ;;  %318 = vmatpush.msra.mxu2 %v529_v5 }
  0xe5   :  { %v533_v8 = vpop.eup %532  ;;  %347 = vmatpush.msra.mxu3 %v531_v6 }
  0xe6   :  { %v535_v9 = vpop.eup %534  ;;  %319 = vmatpush.msra.mxu2 %v533_v8 }
  0xe7   :  { %348 = vmatpush.msra.mxu3 %v535_v9  ;;  %506 = vmatmul.msk.f32.vlgmr.msra.gmra.mxu2 %vm291_vm1, %v263_v7  ;;  %v457_v9 = vlaneseq }
  0xe8   :  { %510 = vmatmul.msk.f32.vlgmr.msra.gmra.mxu3 %vm291_vm1, %v263_v7 }
  0xe9   :  { %vm459_vm5 = vcmp.lt.s32.totalorder %v457_v9, 256 }
  0xef   :  { %507 = vmatmul.msk.f32.gmra.mxu2 %vm291_vm1, %v264_v11 }
  0xf0   :  { %511 = vmatmul.msk.f32.gmra.mxu3 %vm291_vm1, %v264_v11 }
  0xf7   :  { %508 = vmatmul.msk.f32.gmra.mxu2 %vm291_vm1, %v265_v13 }
  0xf8   :  { %512 = vmatmul.msk.f32.gmra.mxu3 %vm291_vm1, %v265_v13 }
  0xff   :  { %509 = vmatmul.msk.f32.gmra.mxu2 %vm291_vm1, %v266_v14 }
 0x100   :  { %513 = vmatmul.msk.f32.gmra.mxu3 %vm291_vm1, %v266_v14 }
 0x16a   :  { %v321_v15 = vpop.f32.mrf.mxu2 }
 0x16b   :  { %v350_v16 = vpop.f32.mrf.mxu3  ;;  %v322_v33 = vadd.f32 %v321_v15, %v274_v31 }
 0x16c   :  { %v351_v34 = vadd.f32 %v350_v16, %v274_v31 }
 0x172   :  { %v324_v17 = vpop.f32.mrf.mxu2 }
 0x173   :  { %v353_v18 = vpop.f32.mrf.mxu3  ;;  %v325_v30 = vadd.f32 %v324_v17, %v279_v27 }
 0x174   :  { %v354_v32 = vadd.f32 %v353_v18, %v279_v27 }
 0x17a   :  { %v327_v20 = vpop.f32.mrf.mxu2 }
 0x17b   :  { %v356_v21 = vpop.f32.mrf.mxu3  ;;  %v328_v24 = vadd.f32 %v327_v20, %v284_v22 }
 0x17c   :  { %v357_v28 = vadd.f32 %v356_v21, %v284_v22 }
 0x182   :  { %v330_v23 = vpop.f32.mrf.mxu2 }
 0x183   :  { %v331_v25 = vadd.f32 %v330_v23, %v289_v19  ;;  %v359_v26 = vpop.f32.mrf.mxu3 }
 0x184   :  { %v360_v29 = vadd.f32 %v359_v26, %v289_v19 }
 0x185   :  { %536 = vtanh.f32 %v331_v25 }
 0x186   :  { %538 = vtanh.f32 %v360_v29 }
 0x187   :  { %540 = vtanh.f32 %v328_v24 }
 0x188   :  { %542 = vtanh.f32 %v357_v28 }
 0x189   :  { %544 = vtanh.f32 %v325_v30 }
 0x18a   :  { %546 = vtanh.f32 %v354_v32 }
 0x18b   :  { %v537_v35 = vpop.eup %536  ;;  %548 = vtanh.f32 %v322_v33 }
 0x18c   :  { %v539_v36 = vpop.eup %538  ;;  %550 = vtanh.f32 %v351_v34  ;;  %393 = vmatpush.msrb.mxu2 %v537_v35 }
 0x18d   :  { %v541_v37 = vpop.eup %540  ;;  %413 = vmatpush.msrb.mxu3 %v539_v36 }
 0x18e   :  { %v543_v38 = vpop.eup %542  ;;  %394 = vmatpush.msrb.mxu2 %v541_v37 }
 0x18f   :  { %v545_v39 = vpop.eup %544  ;;  %414 = vmatpush.msrb.mxu3 %v543_v38 }
 0x190   :  { %v547_v40 = vpop.eup %546  ;;  %395 = vmatpush.msrb.mxu2 %v545_v39 }
 0x191   :  { %v549_v42 = vpop.eup %548  ;;  %415 = vmatpush.msrb.mxu3 %v547_v40 }
 0x192   :  { %v551_v43 = vpop.eup %550  ;;  %396 = vmatpush.msrb.mxu2 %v549_v42 }
 0x193   :  { %416 = vmatpush.msrb.mxu3 %v551_v43  ;;  %514 = vmatmul.msk.f32.vlgmr.msrb.gmra.mxu2 %vm291_vm1, %v370_v41 }
 0x194   :  { %515 = vmatmul.msk.f32.vlgmr.msrb.gmra.mxu3 %vm291_vm1, %v370_v41 }
 0x216   :  { %v398_v46 = vpop.f32.mrf.mxu2 }
 0x217   :  { %v399_v47 = vadd.f32 %v398_v46, %v377_v45  ;;  %v418_v48 = vpop.f32.mrf.mxu3 }
 0x218   :  { %v419_v49 = vadd.f32 %v418_v48, %v377_v45 }
 0x219   :  { %v423_v50 = vand.u32 2147483647, %v399_v47  ;;  %v421_v12 = vmax.f32 %v399_v47, 0.0 }
 0x21a   :  { %v424_v51 = vand.u32 2147483647, %v419_v49  ;;  %v422_v8 = vmax.f32 %v419_v49, 0.0 }
 0x21b   :  { %v425_v52 = vsub.f32 0.0, %v423_v50 }
 0x21c   :  { %v426_v53 = vsub.f32 0.0, %v424_v51 }
 0x21d   :  { %v427_v54 = vmul.f32 1.442695, %v425_v52 }
 0x21e   :  { %v429_v55 = vmul.f32 1.442695, %v426_v53 }
 0x21f   :  { %552 = vpow2.f32 %v427_v54 }
 0x220   :  { %554 = vpow2.f32 %v429_v55 }
 0x225   :  { %v553_v56 = vpop.eup %552 }
 0x226   :  { %v555_v57 = vpop.eup %554  ;;  %v431_v58 = vadd.f32 1.0, %v553_v56  ;;  %v434_v60 = vmul.f32 -0.5, %v553_v56  ;;  %v437_v0 = vand.u32 2147483647, %v553_v56 }
 0x227   :  { %v440_v59 = vadd.f32 1.0, %v555_v57  ;;  %v443_v61 = vmul.f32 -0.5, %v555_v57  ;;  %v446_v1 = vand.u32 2147483647, %v555_v57 }
 0x228   :  { %556 = vlog2.f32 %v431_v58  ;;  %v435_v62 = vadd.f32 1.0, %v434_v60  ;;  %vm438_vm2 = vcmp.lt.f32.partialorder %v437_v0, 0.0004427343 }
 0x229   :  { %558 = vlog2.f32 %v440_v59  ;;  %v444_v63 = vadd.f32 1.0, %v443_v61  ;;  %vm447_vm3 = vcmp.lt.f32.partialorder %v446_v1, 0.0004427343 }
 0x22a   :  { %v436_v5 = vmul.f32 %v553_v56, %v435_v62 }
 0x22b   :  { %v445_v7 = vmul.f32 %v555_v57, %v444_v63 }
 0x22e   :  { %v557_v2 = vpop.eup %556 }
 0x22f   :  { %v559_v3 = vpop.eup %558  ;;  %v433_v4 = vmul.f32 0.6931472, %v557_v2 }
 0x230   :  { %v442_v6 = vmul.f32 0.6931472, %v559_v3 }
 0x231   :  { %v439_v10 = vsel %vm438_vm2, %v436_v5, %v433_v4 }
 0x232   :  { %v448_v11 = vsel %vm447_vm3, %v445_v7, %v442_v6  ;;  %v449_v14 = vadd.f32 %v439_v10, %v421_v12 }
 0x233   :  { %v450_v13 = vadd.f32 %v448_v11, %v422_v8 }
 0x235   :  { %v453_v15 = vrot.slane %v450_v13, 7 }
 0x237   :  { %v455_v16 = vsel %vm454_vm4, %v449_v14, %v453_v15 }
 0x238   :  { %461 = vst.msk [vmem:[%s811_s7] sm:$0x3] %vm459_vm5, %v455_v16 }

</bundles_post_ra>
